<compile_context>
chip_gen: v7x
topology: tpu7x:2x2x1
jax: 0.10.0
libtpu: 0.0.40
codegen_flags: <defaults>
</compile_context>

<pallas_src>
import functools
import math
from typing import NamedTuple

import jax
import jax.numpy as jnp
from jax.experimental import pallas as pl
from jax.experimental.pallas import tpu as pltpu


# ----------------------------------------------------------------------------
# Helpers
# ----------------------------------------------------------------------------
def _round_up(x, m):
    return (x + m - 1) // m * m


_ROW_TILES = (512, 384, 256, 128, 64, 32, 16, 8)


def _sub_rows_for(tm):
    if tm % 256 == 0:
        return 256
    if tm % 128 == 0:
        return 128
    return tm


@functools.lru_cache(maxsize=None)
def _vmem_budget_bytes():
    """~3/4 of per-core VMEM capacity; also used as vmem_limit_bytes."""
    cap = None
    try:
        cap = getattr(pltpu.get_tpu_info(), "vmem_capacity_bytes", None)
    except Exception:
        cap = None
    if not cap:
        cap = 64 * 1024 * 1024          # conservative: v7x per-TensorCore VMEM
    return (int(cap) * 3) // 4          # headroom for Mosaic-internal scratch


def _resident_spec(shape, index_map):
    """Grid-invariant block: single-buffer it (no pipelining benefit, halves
    its VMEM footprint).  Falls back gracefully on older BlockSpec signatures."""
    try:
        return pl.BlockSpec(shape, index_map, pipeline_mode=pl.Buffered(1))
    except (AttributeError, TypeError, ValueError):
        return pl.BlockSpec(shape, index_map)


def _row_cap(n, row_align):
    na = _round_up(max(n, 1), row_align)
    cap = min(512, na)
    if na >= 2 * row_align:
        # keep >=2 grid steps: feeds both v7x TensorCores + keeps DMA pipelined
        cap = min(cap, max(row_align, _round_up(na // 2, row_align)))
    return cap


def _pick_tm_single(n, hp, lp, act_bytes, w_bytes, out_bytes, budget, row_align):
    cap = _row_cap(n, row_align)
    resident = (hp * hp + hp * lp) * w_bytes + (3 * hp + lp) * 4
    for tm in _ROW_TILES:
        if tm > cap or tm % row_align:
            continue
        sub = _sub_rows_for(tm)
        per_tile = (2 * tm * hp * act_bytes       # double-buffered x tiles
                    + 2 * tm * lp * out_bytes     # double-buffered out tiles
                    + 4 * sub * hp * 4)           # live f32 intermediates
        if resident + per_tile <= budget:
            return tm
    return row_align


def _pick_tiles_ksplit(n, hp, lp, act_bytes, w_bytes, out_bytes, budget,
                       row_align):
    cap = _row_cap(n, row_align)
    resident = hp * lp * w_bytes + (3 * hp + lp) * 4      # resident w2 + biases
    for tm in _ROW_TILES:
        if tm > cap or tm % row_align:
            continue
        sub = _sub_rows_for(tm)
        for tk in (512, 256, 128):
            if hp % tk:
                continue
            if tk >= hp and hp > 128:                     # prefer >=2 K steps
                continue
            per = (2 * tm * tk * act_bytes                # x blocks
                   + 2 * tk * hp * w_bytes                # streamed w1 blocks
                   + tm * hp * 4                          # f32 accumulator
                   + 2 * tm * lp * out_bytes              # out blocks
                   + 4 * sub * hp * 4)                    # epilogue temps
            if resident + per <= budget:
                return tm, tk
    return row_align, 128


# ----------------------------------------------------------------------------
# Kernels
# ----------------------------------------------------------------------------
def _relu_ln_linear2(h_pre, b1, g, beta, mask, inv_h, w2, b2, out_dtype):
    """bias + ReLU + LayerNorm(eps=1e-12) + Linear2 on one row sub-chunk.

    h_pre: (rows, Hp) f32 pre-bias Linear1 output.  Padded hidden columns of
    h_pre are exactly zero; `mask` re-zeroes them after centering so the
    two-pass variance only sees the true H columns (numerically robust).
    """
    h = jnp.maximum(h_pre + b1, 0.0)
    mean = jnp.sum(h, axis=-1, keepdims=True) * inv_h
    c = (h - mean) * mask
    var = jnp.sum(c * c, axis=-1, keepdims=True) * inv_h
    hn = c * jax.lax.rsqrt(var + 1e-12) * g + beta
    y = jnp.dot(hn.astype(w2.dtype), w2, preferred_element_type=jnp.float32)
    return (y + b2).astype(out_dtype)


def _row_loop(tm, sub_rows, process):
    n_sub = tm // sub_rows
    if n_sub == 1:
        process(0)
    else:
        def body(s, carry):
            process(pl.multiple_of(s * sub_rows, sub_rows))
            return carry
        jax.lax.fori_loop(0, n_sub, body, None, unroll=True)


def _region_cls_kernel(x_ref, w1_ref, b1_ref, g_ref, beta_ref, w2_ref, b2_ref,
                       out_ref, *, true_h, sub_rows):
    tm, hp = x_ref.shape
    inv_h = jnp.float32(1.0 / true_h)
    mask = (jax.lax.broadcasted_iota(jnp.int32, (1, hp), 1)
            < true_h).astype(jnp.float32)
    b1 = b1_ref[...]
    g = g_ref[...]
    beta = beta_ref[...]
    b2 = b2_ref[...]

    def process(r):
        h_pre = jnp.dot(x_ref[pl.ds(r, sub_rows), :], w1_ref[...],
                        preferred_element_type=jnp.float32)
        out_ref[pl.ds(r, sub_rows), :] = _relu_ln_linear2(
            h_pre, b1, g, beta, mask, inv_h, w2_ref[...], b2, out_ref.dtype)

    _row_loop(tm, sub_rows, process)


def _region_cls_ksplit_kernel(x_ref, w1_ref, b1_ref, g_ref, beta_ref, w2_ref,
                              b2_ref, out_ref, acc_ref, *, true_h, sub_rows):
    k = pl.program_id(1)

    @pl.when(k == 0)
    def _():
        acc_ref[...] = jnp.zeros_like(acc_ref)

    acc_ref[...] += jnp.dot(x_ref[...], w1_ref[...],
                            preferred_element_type=jnp.float32)

    @pl.when(k == pl.num_programs(1) - 1)
    def _():
        tm, hp = acc_ref.shape
        inv_h = jnp.float32(1.0 / true_h)
        mask = (jax.lax.broadcasted_iota(jnp.int32, (1, hp), 1)
                < true_h).astype(jnp.float32)
        b1 = b1_ref[...]
        g = g_ref[...]
        beta = beta_ref[...]
        b2 = b2_ref[...]

        def process(r):
            out_ref[pl.ds(r, sub_rows), :] = _relu_ln_linear2(
                acc_ref[pl.ds(r, sub_rows), :], b1, g, beta, mask, inv_h,
                w2_ref[...], b2, out_ref.dtype)

        _row_loop(tm, sub_rows, process)


# ----------------------------------------------------------------------------
# Parameter preparation (pads / casts ONCE, out of the per-call path)
# ----------------------------------------------------------------------------
class RegionClassificationParams(NamedTuple):
    w1: jax.Array      # (Hp, Hp), matmul dtype, (in, out) layout
    b1: jax.Array      # (1, Hp) f32
    gamma: jax.Array   # (1, Hp) f32
    beta: jax.Array    # (1, Hp) f32
    w2: jax.Array      # (Hp, Lp), matmul dtype, (in, out) layout
    b2: jax.Array      # (1, Lp) f32
    hidden: int
    label_dim: int


def prepare_params(w1, b1, gamma, beta, w2, b2, *, matmul_dtype=None):
    """w1:(H,H), w2:(H,L) in (in,out) layout (PyTorch weight.T).  Pass
    matmul_dtype=jnp.bfloat16 for MXU-native throughput; accumulation and
    LayerNorm statistics always stay f32."""
    H = w1.shape[0]
    L = w2.shape[1]
    Hp = _round_up(H, 128)
    Lp = _round_up(L, 128)
    wdt = jnp.dtype(matmul_dtype) if matmul_dtype is not None else w1.dtype

    def pad2(a, r, c):
        pr, pc = r - a.shape[0], c - a.shape[1]
        return jnp.pad(a, ((0, pr), (0, pc))) if (pr or pc) else a

    def pad_row(v, c):
        v = v.reshape(1, -1)
        pc = c - v.shape[1]
        return jnp.pad(v, ((0, 0), (0, pc))) if pc else v

    return RegionClassificationParams(
        w1=pad2(w1, Hp, Hp).astype(wdt),
        b1=pad_row(b1, Hp).astype(jnp.float32),
        gamma=pad_row(gamma, Hp).astype(jnp.float32),
        beta=pad_row(beta, Hp).astype(jnp.float32),
        w2=pad2(w2, Hp, Lp).astype(wdt),
        b2=pad_row(b2, Lp).astype(jnp.float32),
        hidden=H,
        label_dim=L,
    )


# ----------------------------------------------------------------------------
# Wrapper
# ----------------------------------------------------------------------------
def region_classification(x, params, *, force_k_split=False):
    """x: (..., H) -> (..., label_dim), params from prepare_params()."""
    *lead, H = x.shape
    assert H == params.hidden, (H, params.hidden)
    L = params.label_dim
    Hp = params.w1.shape[0]
    Lp = params.w2.shape[1]
    N = math.prod(lead) if lead else 1
    out_dtype = x.dtype
    mm_dtype = params.w1.dtype

    act_bytes = jnp.dtype(mm_dtype).itemsize
    w_bytes = act_bytes
    out_bytes = jnp.dtype(out_dtype).itemsize
    row_align = 8 if act_bytes >= 4 else (16 if act_bytes == 2 else 32)
    budget = _vmem_budget_bytes()

    resident_w = (Hp * Hp + Hp * Lp) * w_bytes
    use_ksplit = force_k_split or resident_w > (6 * budget) // 10

    if use_ksplit:
        TM, TK = _pick_tiles_ksplit(N, Hp, Lp, act_bytes, w_bytes, out_bytes,
                                    budget, row_align)
    else:
        TM = _pick_tm_single(N, Hp, Lp, act_bytes, w_bytes, out_bytes,
                             budget, row_align)
        TK = Hp
    sub = _sub_rows_for(TM)
    Np = _round_up(N, TM)

    x2 = x.reshape(N, H)
    if x2.dtype != mm_dtype:
        x2 = x2.astype(mm_dtype)
    if Np != N or Hp != H:
        # Only pad the activation when the shape actually requires it.
        x2 = jnp.pad(x2, ((0, Np - N), (0, Hp - H)))

    n_m = Np // TM
    flops = 2 * Np * Hp * Hp + 2 * Np * Hp * Lp
    w1_reads = n_m if use_ksplit else 1          # K-split re-streams w1 per M tile
    bytes_accessed = (Np * Hp * act_bytes
                      + w1_reads * Hp * Hp * w_bytes
                      + Hp * Lp * w_bytes
                      + (3 * Hp + Lp) * 4
                      + Np * Lp * out_bytes)
    cost = pl.CostEstimate(flops=flops, transcendentals=Np,
                           bytes_accessed=bytes_accessed)

    if not use_ksplit:
        kernel = functools.partial(_region_cls_kernel, true_h=H, sub_rows=sub)
        out_p = pl.pallas_call(
            kernel,
            out_shape=jax.ShapeDtypeStruct((Np, Lp), out_dtype),
            grid=(n_m,),
            in_specs=[
                pl.BlockSpec((TM, Hp), lambda i: (i, 0)),      # x streams
                _resident_spec((Hp, Hp), lambda i: (0, 0)),    # w1 resident
                _resident_spec((1, Hp), lambda i: (0, 0)),     # b1
                _resident_spec((1, Hp), lambda i: (0, 0)),     # gamma
                _resident_spec((1, Hp), lambda i: (0, 0)),     # beta
                _resident_spec((Hp, Lp), lambda i: (0, 0)),    # w2 resident
                _resident_spec((1, Lp), lambda i: (0, 0)),     # b2
            ],
            out_specs=pl.BlockSpec((TM, Lp), lambda i: (i, 0)),
            compiler_params=pltpu.CompilerParams(
                dimension_semantics=("parallel",),
                vmem_limit_bytes=budget),
            cost_estimate=cost,
        )(x2, params.w1, params.b1, params.gamma, params.beta,
          params.w2, params.b2)
    else:
        kernel = functools.partial(_region_cls_ksplit_kernel, true_h=H,
                                   sub_rows=sub)
        out_p = pl.pallas_call(
            kernel,
            out_shape=jax.ShapeDtypeStruct((Np, Lp), out_dtype),
            grid=(n_m, Hp // TK),
            in_specs=[
                pl.BlockSpec((TM, TK), lambda i, k: (i, k)),   # x blocks
                pl.BlockSpec((TK, Hp), lambda i, k: (k, 0)),   # w1 streams
                _resident_spec((1, Hp), lambda i, k: (0, 0)),  # b1
                _resident_spec((1, Hp), lambda i, k: (0, 0)),  # gamma
                _resident_spec((1, Hp), lambda i, k: (0, 0)),  # beta
                _resident_spec((Hp, Lp), lambda i, k: (0, 0)), # w2 resident
                _resident_spec((1, Lp), lambda i, k: (0, 0)),  # b2
            ],
            out_specs=pl.BlockSpec((TM, Lp), lambda i, k: (i, 0)),
            scratch_shapes=[pltpu.VMEM((TM, Hp), jnp.float32)],
            compiler_params=pltpu.CompilerParams(
                dimension_semantics=("parallel", "arbitrary"),
                vmem_limit_bytes=budget),
            cost_estimate=cost,
        )(x2, params.w1, params.b1, params.gamma, params.beta,
          params.w2, params.b2)

    out = out_p[:N, :L]
    return out.reshape(*lead, L) if lead else out.reshape(L)


# ----------------------------------------------------------------------------
# Pure-JAX reference
# ----------------------------------------------------------------------------
def reference(x, w1, b1, gamma, beta, w2, b2):
    h = jnp.maximum(x @ w1 + b1, 0.0)
    mean = jnp.mean(h, axis=-1, keepdims=True)
    var = jnp.mean((h - mean) ** 2, axis=-1, keepdims=True)
    hn = (h - mean) / jnp.sqrt(var + 1e-12) * gamma + beta
    return hn @ w2 + b2


# ----------------------------------------------------------------------------
# Demo / self-test
# ----------------------------------------------------------------------------
if __name__ == "__main__":
    key = jax.random.PRNGKey(0)
    batch, seq, hidden, label_dim = 2, 8, 32, 12
    ks = jax.random.split(key, 8)
    x = jax.random.normal(ks[0], (batch, seq, hidden), dtype=jnp.float32)
    # nn.Linear weight is (out, in); kernels take the (in, out) transpose.
    w1 = jax.random.normal(ks[1], (hidden, hidden), dtype=jnp.float32) * 0.05
    b1 = jax.random.normal(ks[2], (hidden,), dtype=jnp.float32) * 0.05
    gamma = 1.0 + 0.1 * jax.random.normal(ks[3], (hidden,), dtype=jnp.float32)
    beta = 0.1 * jax.random.normal(ks[4], (hidden,), dtype=jnp.float32)
    w2 = jax.random.normal(ks[5], (hidden, label_dim), dtype=jnp.float32) * 0.05
    b2 = jax.random.normal(ks[6], (label_dim,), dtype=jnp.float32) * 0.05

    ref = reference(x, w1, b1, gamma, beta, w2, b2)

    # 1) f32 operands, single-pass (weights VMEM-resident) path.
    p32 = prepare_params(w1, b1, gamma, beta, w2, b2)
    out = jax.block_until_ready(region_classification(x, p32))
    assert out.shape == (batch, seq, label_dim)
    assert jnp.allclose(out, ref, atol=5e-3, rtol=5e-3), "f32 path mismatch"

    # 2) bf16 matmul operands (MXU-native), f32 accumulation/LN stats.
    pbf = prepare_params(w1, b1, gamma, beta, w2, b2, matmul_dtype=jnp.bfloat16)
    out_bf = jax.block_until_ready(region_classification(x, pbf))
    assert jnp.allclose(out_bf, ref, atol=5e-2, rtol=5e-2), "bf16 path mismatch"

    # 3) K-split path (used automatically when w1 cannot stay VMEM-resident);
    #    forced here at a small shape so the accumulation epilogue is exercised.
    hidden2, label2, n2 = 256, 40, 64
    k2 = jax.random.split(jax.random.PRNGKey(1), 8)
    x2 = jax.random.normal(k2[0], (n2, hidden2), dtype=jnp.float32)
    w1b = jax.random.normal(k2[1], (hidden2, hidden2), dtype=jnp.float32) * 0.03
    b1b = jax.random.normal(k2[2], (hidden2,), dtype=jnp.float32) * 0.03
    g2 = 1.0 + 0.1 * jax.random.normal(k2[3], (hidden2,), dtype=jnp.float32)
    be2 = 0.1 * jax.random.normal(k2[4], (hidden2,), dtype=jnp.float32)
    w2b = jax.random.normal(k2[5], (hidden2, label2), dtype=jnp.float32) * 0.03
    b2b = jax.random.normal(k2[6], (label2,), dtype=jnp.float32) * 0.03
    ref2 = reference(x2, w1b, b1b, g2, be2, w2b, b2b)
    p2 = prepare_params(w1b, b1b, g2, be2, w2b, b2b)
    out2 = jax.block_until_ready(
        region_classification(x2, p2, force_k_split=True))
    assert out2.shape == (n2, label2)
    assert jnp.allclose(out2, ref2, atol=5e-3, rtol=5e-3), "k-split mismatch"

    print("KERNEL_OK")
</pallas_src>

<mosaic_0001>
module attributes {stable_mosaic.version = 11 : i64} {
  func.func @_region_cls_kernel(%arg0: i32, %arg1: memref<8x128xf32, #tpu.memory_space<vmem>>, %arg2: memref<128x128xf32, #tpu.memory_space<vmem>>, %arg3: memref<1x128xf32, #tpu.memory_space<vmem>>, %arg4: memref<1x128xf32, #tpu.memory_space<vmem>>, %arg5: memref<1x128xf32, #tpu.memory_space<vmem>>, %arg6: memref<128x128xf32, #tpu.memory_space<vmem>>, %arg7: memref<1x128xf32, #tpu.memory_space<vmem>>, %arg8: memref<8x128xf32, #tpu.memory_space<vmem>>) attributes {dimension_semantics = [#tpu.dimension_semantics<parallel>], iteration_bounds = array<i64: 2>, scalar_prefetch = 0 : i64, scratch_operands = 0 : i64, tpu.core_type = #tpu.core_type<tc>, window_params = [{transform_indices = @transform_0, window_bounds = array<i64: 8, 128>}, {pipeline_mode = #tpu.pipeline_mode<synchronous>, transform_indices = @transform_1, window_bounds = array<i64: 128, 128>}, {pipeline_mode = #tpu.pipeline_mode<synchronous>, transform_indices = @transform_2, window_bounds = array<i64: 1, 128>}, {pipeline_mode = #tpu.pipeline_mode<synchronous>, transform_indices = @transform_3, window_bounds = array<i64: 1, 128>}, {pipeline_mode = #tpu.pipeline_mode<synchronous>, transform_indices = @transform_4, window_bounds = array<i64: 1, 128>}, {pipeline_mode = #tpu.pipeline_mode<synchronous>, transform_indices = @transform_5, window_bounds = array<i64: 128, 128>}, {pipeline_mode = #tpu.pipeline_mode<synchronous>, transform_indices = @transform_6, window_bounds = array<i64: 1, 128>}, {transform_indices = @transform_7, window_bounds = array<i64: 8, 128>}]} {
    %0 = tpu.iota {dimensions = array<i32: 1>} : vector<1x128xi32>
    %c32_i32 = arith.constant 32 : i32
    %1 = vector.broadcast %c32_i32 : i32 to vector<1x128xi32>
    %2 = arith.cmpi slt, %0, %1 : vector<1x128xi32>
    %3 = arith.extui %2 : vector<1x128xi1> to vector<1x128xi32>
    %4 = arith.sitofp %3 : vector<1x128xi32> to vector<1x128xf32>
    %c0 = arith.constant 0 : index
    %c0_0 = arith.constant 0 : index
    %5 = vector.load %arg3[%c0, %c0_0] : memref<1x128xf32, #tpu.memory_space<vmem>>, vector<1x128xf32>
    %c0_1 = arith.constant 0 : index
    %c0_2 = arith.constant 0 : index
    %6 = vector.load %arg4[%c0_1, %c0_2] : memref<1x128xf32, #tpu.memory_space<vmem>>, vector<1x128xf32>
    %c0_3 = arith.constant 0 : index
    %c0_4 = arith.constant 0 : index
    %7 = vector.load %arg5[%c0_3, %c0_4] : memref<1x128xf32, #tpu.memory_space<vmem>>, vector<1x128xf32>
    %c0_5 = arith.constant 0 : index
    %c0_6 = arith.constant 0 : index
    %8 = vector.load %arg7[%c0_5, %c0_6] : memref<1x128xf32, #tpu.memory_space<vmem>>, vector<1x128xf32>
    %c0_7 = arith.constant 0 : index
    %c0_8 = arith.constant 0 : index
    %9 = vector.load %arg1[%c0_7, %c0_8] : memref<8x128xf32, #tpu.memory_space<vmem>>, vector<8x128xf32>
    %c0_9 = arith.constant 0 : index
    %c0_10 = arith.constant 0 : index
    %10 = vector.load %arg2[%c0_9, %c0_10] : memref<128x128xf32, #tpu.memory_space<vmem>>, vector<128x128xf32>
    %cst = arith.constant dense<0.000000e+00> : vector<8x128xf32>
    %11 = tpu.matmul %9, %10, %cst {dimension_numbers = #tpu.dot_dimension_numbers<[1], [0], [0], [1], [0, 0, 1, 1], [], []>} : vector<8x128xf32>, vector<128x128xf32>, vector<8x128xf32> -> vector<8x128xf32>
    %c0_11 = arith.constant 0 : index
    %c0_12 = arith.constant 0 : index
    %12 = vector.load %arg6[%c0_11, %c0_12] : memref<128x128xf32, #tpu.memory_space<vmem>>, vector<128x128xf32>
    %13 = vector.broadcast %5 : vector<1x128xf32> to vector<8x128xf32>
    %14 = arith.addf %11, %13 : vector<8x128xf32>
    %cst_13 = arith.constant 0.000000e+00 : f32
    %15 = vector.broadcast %cst_13 : f32 to vector<8x128xf32>
    %16 = arith.maximumf %14, %15 : vector<8x128xf32>
    %cst_14 = arith.constant dense<0.000000e+00> : vector<8xf32>
    %17 = vector.multi_reduction <add>, %16, %cst_14 [1] : vector<8x128xf32> to vector<8xf32>
    %18 = vector.shape_cast %17 : vector<8xf32> to vector<8x1xf32>
    %cst_15 = arith.constant 3.125000e-02 : f32
    %19 = vector.broadcast %cst_15 : f32 to vector<8x1xf32>
    %20 = arith.mulf %18, %19 : vector<8x1xf32>
    %21 = vector.broadcast %20 : vector<8x1xf32> to vector<8x128xf32>
    %22 = arith.subf %16, %21 : vector<8x128xf32>
    %23 = vector.broadcast %4 : vector<1x128xf32> to vector<8x128xf32>
    %24 = arith.mulf %22, %23 : vector<8x128xf32>
    %25 = arith.mulf %24, %24 : vector<8x128xf32>
    %cst_16 = arith.constant dense<0.000000e+00> : vector<8xf32>
    %26 = vector.multi_reduction <add>, %25, %cst_16 [1] : vector<8x128xf32> to vector<8xf32>
    %27 = vector.shape_cast %26 : vector<8xf32> to vector<8x1xf32>
    %cst_17 = arith.constant 3.125000e-02 : f32
    %28 = vector.broadcast %cst_17 : f32 to vector<8x1xf32>
    %29 = arith.mulf %27, %28 : vector<8x1xf32>
    %cst_18 = arith.constant 9.99999996E-13 : f32
    %30 = vector.broadcast %cst_18 : f32 to vector<8x1xf32>
    %31 = arith.addf %29, %30 : vector<8x1xf32>
    %32 = math.rsqrt %31 : vector<8x1xf32>
    %33 = vector.broadcast %32 : vector<8x1xf32> to vector<8x128xf32>
    %34 = arith.mulf %24, %33 : vector<8x128xf32>
    %35 = vector.broadcast %6 : vector<1x128xf32> to vector<8x128xf32>
    %36 = arith.mulf %34, %35 : vector<8x128xf32>
    %37 = vector.broadcast %7 : vector<1x128xf32> to vector<8x128xf32>
    %38 = arith.addf %36, %37 : vector<8x128xf32>
    %cst_19 = arith.constant dense<0.000000e+00> : vector<8x128xf32>
    %39 = tpu.matmul %38, %12, %cst_19 {dimension_numbers = #tpu.dot_dimension_numbers<[1], [0], [0], [1], [0, 0, 1, 1], [], []>} : vector<8x128xf32>, vector<128x128xf32>, vector<8x128xf32> -> vector<8x128xf32>
    %40 = vector.broadcast %8 : vector<1x128xf32> to vector<8x128xf32>
    %41 = arith.addf %39, %40 : vector<8x128xf32>
    %c0_20 = arith.constant 0 : index
    %c0_21 = arith.constant 0 : index
    %42 = vector.load %arg8[%c0_20, %c0_21] : memref<8x128xf32, #tpu.memory_space<vmem>>, vector<8x128xf32>
    tpu.vector_store %arg8[%c0_20, %c0_21], %41 {strides = array<i32>} : memref<8x128xf32, #tpu.memory_space<vmem>>, vector<8x128xf32>,
    return
  }
  func.func @transform_0(%arg0: i32) -> (i32, i32) {
    %c0_i32 = arith.constant 0 : i32
    %c0_i32_0 = arith.constant 0 : i32
    return %arg0, %c0_i32 : i32, i32
  }
  func.func @transform_1(%arg0: i32) -> (i32, i32) {
    %c0_i32 = arith.constant 0 : i32
    %c0_i32_0 = arith.constant 0 : i32
    %c0_i32_1 = arith.constant 0 : i32
    return %c0_i32, %c0_i32_0 : i32, i32
  }
  func.func @transform_2(%arg0: i32) -> (i32, i32) {
    %c0_i32 = arith.constant 0 : i32
    %c0_i32_0 = arith.constant 0 : i32
    %c0_i32_1 = arith.constant 0 : i32
    return %c0_i32, %c0_i32_0 : i32, i32
  }
  func.func @transform_3(%arg0: i32) -> (i32, i32) {
    %c0_i32 = arith.constant 0 : i32
    %c0_i32_0 = arith.constant 0 : i32
    %c0_i32_1 = arith.constant 0 : i32
    return %c0_i32, %c0_i32_0 : i32, i32
  }
  func.func @transform_4(%arg0: i32) -> (i32, i32) {
    %c0_i32 = arith.constant 0 : i32
    %c0_i32_0 = arith.constant 0 : i32
    %c0_i32_1 = arith.constant 0 : i32
    return %c0_i32, %c0_i32_0 : i32, i32
  }
  func.func @transform_5(%arg0: i32) -> (i32, i32) {
    %c0_i32 = arith.constant 0 : i32
    %c0_i32_0 = arith.constant 0 : i32
    %c0_i32_1 = arith.constant 0 : i32
    return %c0_i32, %c0_i32_0 : i32, i32
  }
  func.func @transform_6(%arg0: i32) -> (i32, i32) {
    %c0_i32 = arith.constant 0 : i32
    %c0_i32_0 = arith.constant 0 : i32
    %c0_i32_1 = arith.constant 0 : i32
    return %c0_i32, %c0_i32_0 : i32, i32
  }
  func.func @transform_7(%arg0: i32) -> (i32, i32) {
    %c0_i32 = arith.constant 0 : i32
    %c0_i32_0 = arith.constant 0 : i32
    return %arg0, %c0_i32 : i32, i32
  }
}

</mosaic_0001>

<bundles_post_ra>
// kernel: tpu_custom_call.1
= control target key start
LH: loop header
LB: loop body
LE: loop exit
PB: predicated region body
PF: predicated region fallthrough
CT: control target
= control target key end

     0   :  { %12 = vsyncpa [#allocation3], 0  ;;  %s1369_s0 = inlined_call_operand.hbm [shape: f32[16,128], index: 0, kind: input, shape index: {}]   ;;  %s1370_s1 = inlined_call_operand.hbm [shape: f32[128,128], index: 1, kind: input, shape index: {}]   ;;  %s1371_s2 = inlined_call_operand.vmem [shape: f32[1,128], index: 2, kind: input, shape index: {}]   ;;  %s1372_s3 = inlined_call_operand.vmem [shape: f32[1,128], index: 3, kind: input, shape index: {}]   ;;  %s1373_s4 = inlined_call_operand.vmem [shape: f32[1,128], index: 4, kind: input, shape index: {}]   ;;  %s1374_s5 = inlined_call_operand.hbm [shape: f32[128,128], index: 5, kind: input, shape index: {}]   ;;  %s1375_s6 = inlined_call_operand.vmem [shape: f32[1,128], index: 6, kind: input, shape index: {}]   ;;  %s1376_s7 = inlined_call_operand.hbm [shape: f32[16,128], index: 7, kind: output, shape index: {}]  }
   0x1   :  { %14 = vsyncpa [#allocation3 + $0x1], 0 }
   0x2   :  { %15 = vsyncpa [#allocation6], 0 }
   0x3   :  { %16 = vsyncpa [#allocation4], 0 }
   0x4   :  { %18 = vsyncpa [#allocation4 + $0x1], 0  ;;  %s1102_s24 = smov 0   ;;  %s1104_s25 = smov 0  }
   0x5   :  { %s1106_s26 = smov 0   ;;  %s1108_s27 = smov 0  }
   0x6 LB: > { %s1123_s28 = sadd.s32 4294967295, %s1051_s27   ;;  %s648_s29 = sadd.s32 4294967294, %s1051_s27   ;;  %s1051_s27 = sphi %s1108_s27, %s1396_s27   ;;  %s1047_s26 = sphi %s1106_s26, %s1395_s26   ;;  %s1043_s25 = sphi %s1104_s25, %s1394_s25   ;;  %s1039_s24 = sphi %s1102_s24, %s1393_s24  }
   0x7   : > { %p44_p0 = scmp.ne.s32.totalorder %s1043_s25, %s1039_s24  ;;  %p1377_p1 = scmp.eq.s32.totalorder %s1123_s28, 0 }
   0x8   : > { %p200_p3 = scmp.eq.s32.totalorder %s648_s29, 1  ;;  %p649_p5 = scmp.ge.s32.totalorder %s1051_s27, 1 }
   0x9   : > { %p1132_p4 = por %p1377_p1, %p44_p0  ;;  %p207_p7 = scmp.lt.s32.totalorder %s1051_s27, 3 }
   0xa   : > { %p1137_p6 = por %p200_p3, %p44_p0  ;;  %s1053_s10 = smov [#allocation5]  }
   0xb   : > { %s1380_s30 = scalar_select %p1132_p4, 1, 0 }
   0xc   : > { %s1381_s8 = scalar_select %p1137_p6, 1, 0 }
   0xd   : > { %p1142_p8 = pnand %p649_p5, %p207_p7  ;;  %s219_s11 = sshll.u32 %s1053_s10, 4  ;;  %s1146_s11 = int_to_ptr.vmem [resolvable:$true] %s219_s11 }
   0xe   : > { %s1054_s13 = smov [#allocation7]   ;;  %s895_s17 = scalar_lea.hbm %s1370_s1, 2048 }
   0xf   : > { %p833_p9 = pneg %p1142_p8  ;;  %s241_s14 = sshll.u32 %s1054_s13, 4  ;;  %s1157_s14 = int_to_ptr.vmem [resolvable:$true] %s241_s14 }
  0x10   : > { %p896_p12 = scmp.ne.s32.totalorder %s1370_s1, %s895_s17  ;;  %p902_p5 = scmp.lt.u32.totalorder %s895_s17, %s1370_s1 }
  0x11   : > { %p1153_p11 = pnand %p833_p9, %p1377_p1 }
  0x13   : > { %p897_p13 = pneg %p1153_p11 }
  0x15   : > { %p898_p0 = pnand %p897_p13, %p896_p12 }
  0x17   : > { %p899_p3 = pneg %p898_p0 }
  0x19   : > { %p904_p7 = pnand %p902_p5, %p899_p3 }
  0x1b   : > { %907 = shalt.err (!%p904_p7)
}
  0x1c   : > { %s908_s22 = scalar_lea.vmem %s1146_s11, 2048  ;;  %p916_p2 = scmp.lt.s32.totalorder %s1146_s11, %s1146_s11 }
  0x1d   : > { %p909_p9 = scmp.ne.s32.totalorder %s1146_s11, %s908_s22  ;;  %p917_p12 = scmp.lt.s32.totalorder %s908_s22, %s908_s22 }
  0x1f   : > { %p911_p10 = pnand %p909_p9, %p897_p13  ;;  %p918_p0 = por %p917_p12, %p916_p2 }
  0x21   : > { %p912_p1 = pneg %p911_p10 }
  0x23   : > { %p919_p6 = pnand %p918_p0, %p912_p1 }
  0x25   : > { %922 = shalt.err (!%p919_p6)
}
  0x26   : > { %s1055_s23 = smov 128   ;;  %s1056_s29 = smov 8  }
  0x27   : > { %836 = dma.hbm_to_vmem [thread:$0]  (!%p1153_p11), %s1370_s1, 2048, %s1146_s11, [#allocation6], %s1055_s23, %s1055_s23, %s1056_s29  }
  0x28   : > { %s923_s17 = scalar_lea.hbm %s1374_s5, 2048 }
  0x29   : > { %p924_p2 = scmp.ne.s32.totalorder %s1374_s5, %s923_s17  ;;  %p930_p10 = scmp.lt.u32.totalorder %s923_s17, %s1374_s5 }
  0x2b   : > { %p926_p1 = pnand %p924_p2, %p897_p13 }
  0x2d   : > { %p927_p6 = pneg %p926_p1 }
  0x2f   : > { %p932_p3 = pnand %p930_p10, %p927_p6 }
  0x31   : > { %935 = shalt.err (!%p932_p3)
}
  0x32   : > { %s936_s11 = scalar_lea.vmem %s1157_s14, 2048  ;;  %p944_p12 = scmp.lt.s32.totalorder %s1157_s14, %s1157_s14 }
  0x33   : > { %p937_p5 = scmp.ne.s32.totalorder %s1157_s14, %s936_s11  ;;  %p945_p0 = scmp.lt.s32.totalorder %s936_s11, %s936_s11 }
  0x35   : > { %p939_p7 = pnand %p937_p5, %p897_p13  ;;  %p946_p2 = por %p945_p0, %p944_p12 }
  0x37   : > { %p940_p9 = pneg %p939_p7 }
  0x39   : > { %p947_p1 = pnand %p946_p2, %p940_p9 }
  0x3b   : > { %950 = shalt.err (!%p947_p1)
}
  0x3c   : > { %839 = dma.hbm_to_vmem [thread:$0]  (!%p1153_p11), %s1374_s5, 2048, %s1157_s14, [#allocation6], %s1055_s23, %s1055_s23, %s1056_s29  }
  0x3d   : > { %s1212_s13 = sadd.s32 1, %s1051_s27   ;;  %s31_s12 = sadd.s32 1, %s1047_s26 }
  0x3e   : > { %s28_s15 = ssub.s32 %s1051_s27, %s1212_s13  ;;  %p38_p13 = scmp.ne.s32.totalorder %s1047_s26, %s1043_s25 }
  0x3f   : > { %p29_p6 = scmp.eq.s32.totalorder %s28_s15, 0  ;;  %p39_p10 = scmp.eq.s32.totalorder %s1051_s27, 0 }
  0x40   : > { %p1384_p3 = scmp.eq.s32.totalorder %s1123_s28, 1  ;;  %p850_p7 = scmp.lt.s32.totalorder %s1051_s27, 2 }
  0x41   : > { %s1228_s17 = scalar_select %p29_p6, %s1047_s26, %s31_s12  }
  0x42   : > { %p1222_p5 = por %p1384_p3, %p38_p13  ;;  %p40_p9 = por %p39_p10, %p38_p13 }
  0x43   : > { %s258_s18 = sand.u32 1, %s1047_s26   ;;  %s654_s14 = sshll.u32 %s1051_s27, 7 }
  0x44   : > { %s1385_s16 = scalar_select %p1222_p5, 1, 0 }
  0x45   : > { %s653_s19 = sshll.u32 %s258_s18, 3  ;;  %s1235_s20 = scalar_lea.hbm %s1369_s0, %s654_s14 }
  0x46   : > { %s262_s21 = scalar_lea.vmem [#allocation2], %s653_s19  ;;  %p1239_p11 = pnand %p850_p7, %p40_p9 }
  0x47   : > { %s269_s11 = sshll.u32 %s262_s21, 4  ;;  %s259_s10 = scalar_lea.sflag [#allocation3], %s258_s18  ;;  %s1237_s11 = int_to_ptr.vmem [resolvable:$true] %s269_s11 }
  0x48   : > { %s951_s12 = scalar_lea.hbm %s1235_s20, 128  ;;  %p953_p0 = pneg %p1239_p11 }
  0x49   : > { %p952_p12 = scmp.ne.s32.totalorder %s1235_s20, %s951_s12  ;;  %s956_s14 = scalar_lea.hbm %s1369_s0, 256 }
  0x4a   : > { %p957_p13 = scmp.lt.u32.totalorder %s1235_s20, %s1369_s0  ;;  %p958_p6 = scmp.lt.u32.totalorder %s956_s14, %s951_s12 }
  0x4b   : > { %p954_p2 = pnand %p953_p0, %p952_p12  ;;  %p960_p3 = scmp.lt.u32.totalorder %s951_s12, %s1235_s20 }
  0x4c   : > { %p959_p10 = por %p958_p6, %p957_p13 }
  0x4d   : > { %p955_p1 = pneg %p954_p2 }
  0x4e   : > { %p961_p7 = por %p960_p3, %p959_p10 }
  0x50   : > { %p962_p9 = pnand %p961_p7, %p955_p1 }
  0x52   : > { %965 = shalt.err (!%p962_p9)
}
  0x53   : > { %s966_s18 = scalar_lea.vmem %s1237_s11, 128  ;;  %s1057_s21 = smov [#allocation2]  }
  0x54   : > { %p967_p12 = scmp.ne.s32.totalorder %s1237_s11, %s966_s18  ;;  %s971_s15 = sshll.u32 %s1057_s21, 4  ;;  %s972_s15 = int_to_ptr.vmem [resolvable:$false] %s971_s15 }
  0x55   : > { %s973_s19 = scalar_lea.vmem %s972_s15, 256  ;;  %p974_p4 = scmp.lt.s32.totalorder %s1237_s11, %s972_s15 }
  0x56   : > { %p969_p2 = pnand %p967_p12, %p953_p0  ;;  %p975_p13 = scmp.lt.s32.totalorder %s973_s19, %s966_s18 }
  0x58   : > { %p970_p5 = pneg %p969_p2  ;;  %p976_p6 = por %p975_p13, %p974_p4 }
  0x5a   : > { %p977_p10 = pnand %p976_p6, %p970_p5 }
  0x5c   : > { %980 = shalt.err (!%p977_p10)
}
  0x5d   : > { %843 = dma.hbm_to_vmem [thread:$0]  (!%p1239_p11), %s1235_s20, 128, %s1237_s11, %s259_s10  }
  0x5e   : > { %278 = sbr.rel (%p1142_p8) target bundleno = 896 (0x380), region = 48  ;;  %s1271_s12 = sand.u32 (!%p1142_p8), 1, %s1043_s25  }
  0x5f   : > { %s656_s14 = sshll.u32 (!%p1142_p8), %s1271_s12, 3  ;;  %s281_s23 = scalar_lea.sflag (!%p1142_p8), [#allocation3], %s1271_s12 }
  0x60   : > { %s1277_s29 = scalar_lea.vmem (!%p1142_p8), [#allocation2], %s656_s14  ;;  %p1387_p4 = scmp.ne.s32.totalorder (!%p1142_p8), %s1380_s30, 0 }
  0x65   : > { %1026 = dma.done.wait (%p1387_p4), %s281_s23, 128  }
  0x66   : > { %1028 = vsyncadd (%p1387_p4), %s281_s23, 4294967168  ;;  %p1388_p5 = scmp.eq.s32.totalorder %s1123_s28, 0 }
  0x68   : > { %1030 = dma.done.wait (%p1388_p5), [#allocation6], 4096   ;;  %p1389_p8 = pmov %p1388_p5 }
  0x69   : > { %v1058_v0 = vmov 0.0|0.0   ;;  %vm1059_vm0 = vmmov 0   ;;  %v1060_v1 = vmov 0.0   ;;  %v333_v2 = vld [vmem:[#allocation5] sm:$0xff]  ;;  %v334_v3 = vld [vmem:[#allocation5 + $0x8] sm:$0xff]  ;;  %v335_v4 = vld [vmem:[#allocation5 + $0x10] sm:$0xff]  ;;  %v323_v41 = vlaneseq }
  0x6a   : > { %1032 = vsyncadd (%p1389_p8), [#allocation6], 4294963200  ;;  %773 = vmatprep.subr.bf16.mxu0 %v1058_v0  ;;  %735 = vmatprep.mubr.msk.f32.mxu0 %vm1059_vm0, %v1060_v1  ;;  %v774_v5 = vpack.c.bf16 %v334_v3, %v333_v2  ;;  %v336_v6 = vld [vmem:[#allocation5 + $0x18] sm:$0xff]  ;;  %v337_v8 = vld [vmem:[#allocation5 + $0x20] sm:$0xff]  ;;  %s666_s15 = sshll.u32 %s1123_s28, 7  ;;  %s322_s19 = scalar_lea.vmem [#allocation8], %s656_s14 }
  0x6b   : > { %797 = vmatprep.subr.bf16.mxu1 %v1058_v0  ;;  %770 = vmatprep.mubr.msk.f32.mxu1 %vm1059_vm0, %v1060_v1  ;;  %v777_v7 = vpack.c.bf16 %v336_v6, %v335_v4  ;;  %v338_v9 = vld [vmem:[#allocation5 + $0x28] sm:$0xff]  ;;  %v339_v11 = vld [vmem:[#allocation5 + $0x30] sm:$0xff]  ;;  %v340_v12 = vld [vmem:[#allocation5 + $0x38] sm:$0xff]  ;;  %v324_v42 = vand.u32 127, %v323_v41  ;;  %s559_s23 = sshll.u32 %s322_s19, 4  ;;  %s1325_s9 = scalar_lea.hbm %s1376_s7, %s666_s15  ;;  %s1327_s23 = int_to_ptr.vmem [resolvable:$true] %s559_s23 }
  0x6c   : > { %775 = vmatpush3.bf16.msra.mxu0 %v774_v5  ;;  %v780_v10 = vpack.c.bf16 %v338_v9, %v337_v8  ;;  %v783_v13 = vpack.c.bf16 %v340_v12, %v339_v11  ;;  %v341_v14 = vld [vmem:[#allocation5 + $0x40] sm:$0xff]  ;;  %v342_v15 = vld [vmem:[#allocation5 + $0x48] sm:$0xff]  ;;  %v343_v17 = vld [vmem:[#allocation5 + $0x50] sm:$0xff]  ;;  %s546_s20 = scalar_lea.sflag [#allocation4], %s1271_s12  ;;  %s981_s11 = scalar_lea.vmem %s1327_s23, 128 }
  0x6d   : > { %776 = vmatprep.subr.bf16.mxu0 %v1058_v0  ;;  %v786_v16 = vpack.c.bf16 %v342_v15, %v341_v14  ;;  %v344_v18 = vld [vmem:[#allocation5 + $0x58] sm:$0xff]  ;;  %v345_v20 = vld [vmem:[#allocation5 + $0x60] sm:$0xff]  ;;  %v346_v21 = vld [vmem:[#allocation5 + $0x68] sm:$0xff]  ;;  %vm325_vm1 = vcmp.lt.s32.totalorder %v324_v42, 32  ;;  %p982_p11 = scmp.ne.s32.totalorder %s1327_s23, %s981_s11  ;;  %p1390_p0 = scmp.ne.s32.totalorder %s1385_s16, 0 }
  0x6e   : > { %v789_v19 = vpack.c.bf16 %v344_v18, %v343_v17  ;;  %v792_v22 = vpack.c.bf16 %v346_v21, %v345_v20  ;;  %v347_v23 = vld [vmem:[#allocation5 + $0x70] sm:$0xff]  ;;  %v348_v24 = vld [vmem:[#allocation5 + $0x78] sm:$0xff]  ;;  %v349_v32 = vld [vmem:[#allocation7] sm:$0xff]  ;;  %v660_v45 = vsel %vm325_vm1, 1.0, %v1060_v1  ;;  %s1061_s28 = smov [#allocation8]  }
  0x6f   : > { %v795_v25 = vpack.c.bf16 %v348_v24, %v347_v23  ;;  %v332_v26 = vld [vmem:[%s1277_s29] sm:$0xff]  ;;  %v350_v33 = vld [vmem:[#allocation7 + $0x8] sm:$0xff]  ;;  %v353_v38 = vld [vmem:[#allocation7 + $0x20] sm:$0xff]  ;;  %p983_p1 = pnand %p982_p11, %p1390_p0  ;;  %s985_s14 = sshll.u32 %s1061_s28, 4  ;;  %s986_s14 = int_to_ptr.vmem [resolvable:$false] %s985_s14 }
  0x70   : > { %778 = vmatpush3.bf16.msra.mxu0 %v777_v7  ;;  %v661_v27 = vld [vmem:[%s1371_s2] ss:$0 sm:$0xff]  ;;  %v798_v35 = vpack.c.bf16 %v350_v33, %v349_v32  ;;  %v352_v36 = vld [vmem:[#allocation7 + $0x18] sm:$0xff]  ;;  %v354_v39 = vld [vmem:[#allocation7 + $0x28] sm:$0xff]  ;;  %s987_s22 = scalar_lea.vmem %s986_s14, 256  ;;  %p988_p7 = scmp.lt.s32.totalorder %s1327_s23, %s986_s14 }
  0x71   : > { %779 = vmatprep.subr.bf16.mxu0 %v1058_v0  ;;  %v351_v34 = vld [vmem:[#allocation7 + $0x10] sm:$0xff]  ;;  %v804_v40 = vpack.c.bf16 %v354_v39, %v353_v38  ;;  %v356_v50 = vld [vmem:[#allocation7 + $0x38] sm:$0xff]  ;;  %v357_v52 = vld [vmem:[#allocation7 + $0x40] sm:$0xff]  ;;  %p984_p3 = pneg %p983_p1  ;;  %p989_p9 = scmp.lt.s32.totalorder %s987_s22, %s981_s11 }
  0x72   : > { %799 = vmatpush3.bf16.msra.mxu1 %v798_v35  ;;  %v801_v37 = vpack.c.bf16 %v352_v36, %v351_v34  ;;  %v355_v49 = vld [vmem:[#allocation7 + $0x30] sm:$0xff]  ;;  %v358_v53 = vld [vmem:[#allocation7 + $0x48] sm:$0xff]  ;;  %v360_v56 = vld [vmem:[#allocation7 + $0x58] sm:$0xff] }
  0x73   : > { %800 = vmatprep.subr.bf16.mxu1 %v1058_v0  ;;  %v807_v51 = vpack.c.bf16 %v356_v50, %v355_v49  ;;  %v810_v54 = vpack.c.bf16 %v358_v53, %v357_v52  ;;  %v359_v55 = vld [vmem:[#allocation7 + $0x50] sm:$0xff]  ;;  %v361_v58 = vld [vmem:[#allocation7 + $0x60] sm:$0xff]  ;;  %v362_v59 = vld [vmem:[#allocation7 + $0x68] sm:$0xff]  ;;  %p990_p12 = por %p989_p9, %p988_p7 }
  0x74   : > { %781 = vmatpush3.bf16.msra.mxu0 %v780_v10  ;;  %v813_v57 = vpack.c.bf16 %v360_v56, %v359_v55  ;;  %v816_v60 = vpack.c.bf16 %v362_v59, %v361_v58  ;;  %v363_v61 = vld [vmem:[#allocation7 + $0x70] sm:$0xff]  ;;  %v364_v62 = vld [vmem:[#allocation7 + $0x78] sm:$0xff] }
  0x75   : > { %782 = vmatprep.subr.bf16.mxu0 %v1058_v0  ;;  %v819_v63 = vpack.c.bf16 %v364_v62, %v363_v61  ;;  %v662_v5 = vld [vmem:[%s1372_s3] ss:$0 sm:$0xff]  ;;  %p991_p2 = pnand %p990_p12, %p984_p3 }
  0x76   : > { %802 = vmatpush3.bf16.msra.mxu1 %v801_v37  ;;  %v663_v7 = vld [vmem:[%s1373_s4] ss:$0 sm:$0xff] }
  0x77   : > { %803 = vmatprep.subr.bf16.mxu1 %v1058_v0 }
  0x78   : > { %784 = vmatpush3.bf16.msra.mxu0 %v783_v13 }
  0x79   : > { %785 = vmatprep.subr.bf16.mxu0 %v1058_v0 }
  0x7a   : > { %805 = vmatpush3.bf16.msra.mxu1 %v804_v40 }
  0x7b   : > { %806 = vmatprep.subr.bf16.mxu1 %v1058_v0 }
  0x7c   : > { %787 = vmatpush3.bf16.msra.mxu0 %v786_v16 }
  0x7d   : > { %788 = vmatprep.subr.bf16.mxu0 %v1058_v0 }
  0x7e   : > { %808 = vmatpush3.bf16.msra.mxu1 %v807_v51 }
  0x7f   : > { %809 = vmatprep.subr.bf16.mxu1 %v1058_v0 }
  0x80   : > { %790 = vmatpush3.bf16.msra.mxu0 %v789_v19 }
  0x81   : > { %791 = vmatprep.subr.bf16.mxu0 %v1058_v0 }
  0x82   : > { %811 = vmatpush3.bf16.msra.mxu1 %v810_v54 }
  0x83   : > { %812 = vmatprep.subr.bf16.mxu1 %v1058_v0 }
  0x84   : > { %793 = vmatpush3.bf16.msra.mxu0 %v792_v22 }
  0x85   : > { %794 = vmatprep.subr.bf16.mxu0 %v1058_v0 }
  0x86   : > { %814 = vmatpush3.bf16.msra.mxu1 %v813_v57 }
  0x87   : > { %815 = vmatprep.subr.bf16.mxu1 %v1058_v0 }
  0x88   : > { %796 = vmatpush3.bf16.msra.mxu0 %v795_v25 }
  0x8a   : > { %817 = vmatpush3.bf16.msra.mxu1 %v816_v60 }
  0x8b   : > { %736 = vmatmul.mubr.f32.vlgmr.msra.gmra.mrb[0].mxu0 %v332_v26  ;;  %818 = vmatprep.subr.bf16.mxu1 %v1058_v0  ;;  %v664_v0 = vld [vmem:[%s1375_s6] ss:$0 sm:$0xff] }
  0x8e   : > { %820 = vmatpush3.bf16.msra.mxu1 %v819_v63 }
 0x15e   : > { %v437_v28 = vpop.f32.mrb[0].mxu0 }
 0x15f   : > { %v438_v29 = vadd.f32 %v661_v27, %v437_v28  ;;  %v737_v30 = vpop.f32.mrb[1].mxu0 }
 0x161   : > { %v441_v31 = vmax.f32 %v438_v29, 0.0 }
 0x163   : > { %442 = vadd.xlane.f32.xlu0 %v441_v31 }
 0x1f0   : > { %v443_v43 = vpop.xlane.xlu0 %442 }
 0x1f1   : > { %v444_v44 = vmul.f32 0.03125, %v443_v43 }
 0x1f3   : > { %v445_v46 = vsub.f32 %v441_v31, %v444_v44 }
 0x1f5   : > { %v446_v47 = vmul.f32 %v660_v45, %v445_v46 }
 0x1f7   : > { %v447_v48 = vmul.f32 %v446_v47, %v446_v47 }
 0x1f9   : > { %448 = vadd.xlane.f32.xlu0 %v447_v48 }
 0x286   : > { %v449_v1 = vpop.xlane.xlu0 %448 }
 0x287   : > { %v450_v2 = vmul.f32 0.03125, %v449_v1 }
 0x289   : > { %v451_v3 = vadd.f32 1e-12, %v450_v2 }
 0x28b   : > { %893 = vrsqrt.f32 %v451_v3 }
 0x295   : > { %v894_v4 = vpop.eup %893 }
 0x296   : > { %v453_v6 = vmul.f32 %v894_v4, %v446_v47 }
 0x298   : > { %v460_v8 = vmul.f32 %v662_v5, %v453_v6 }
 0x29a   : > { %v467_v9 = vadd.f32 %v663_v7, %v460_v8 }
 0x29c   : > { %771 = vmatmul.mubr.f32.vlgmr.msra.gmra.mrb[0].mxu1 %v467_v9 }
 0x36f   : > { %v540_v10 = vpop.f32.mrb[0].mxu1 }
 0x370   : > { %v541_v11 = vadd.f32 %v664_v0, %v540_v10  ;;  %v772_v12 = vpop.f32.mrb[1].mxu1 }
 0x372   : > { %544 = vst [vmem:[%s322_s19] sm:$0xff] %v541_v11 }
 0x373   : > { %994 = shalt.err (!%p991_p2)
}
 0x374   : > { %s995_s12 = scalar_lea.hbm %s1325_s9, 128  ;;  %s999_s21 = scalar_lea.hbm %s1376_s7, 256 }
 0x375   : > { %p996_p13 = scmp.ne.s32.totalorder %s1325_s9, %s995_s12  ;;  %p1000_p4 = scmp.lt.u32.totalorder %s1325_s9, %s1376_s7 }
 0x376   : > { %p1001_p5 = scmp.lt.u32.totalorder %s999_s21, %s995_s12  ;;  %p1003_p11 = scmp.lt.u32.totalorder %s995_s12, %s1325_s9 }
 0x377   : > { %p997_p6 = pnand %p996_p13, %p1390_p0 }
 0x378   : > { %p1002_p8 = por %p1001_p5, %p1000_p4 }
 0x379   : > { %p998_p10 = pneg %p997_p6 }
 0x37a   : > { %p1004_p1 = por %p1003_p11, %p1002_p8 }
 0x37c   : > { %p1005_p3 = pnand %p1004_p1, %p998_p10 }
 0x37e   : > { %1008 = shalt.err (!%p1005_p3)
}
 0x37f   : > { %831 = dma.vmem_to_hbm [thread:$0]  (%p1390_p0), %s1327_s23, 128, %s1325_s9, %s546_s20  }
 0x380 PF: > { %s571_s29 = sand.u32 1, %s1039_s24   ;;  %p1391_p7 = scmp.ne.s32.totalorder %s1381_s8, 0 }
 0x381   : > { %p1392_p9 = scmp.ge.s32.totalorder %s1051_s27, 2  ;;  %s572_s30 = scalar_lea.sflag [#allocation4], %s571_s29 }
 0x383   : > { %p845_p12 = pnand %p1392_p9, %p1391_p7 }
 0x385   : > { %1034 = dma.done.wait (!%p845_p12), %s572_s30, 128  }
 0x386   : > { %1036 = vsyncadd (!%p845_p12), %s572_s30, 4294967168  ;;  %p21_p2 = scmp.ge.s32.totalorder %s1212_s13, 4   ;;  %s1393_s24 = smov %s1043_s25 }
 0x387   : > { %s1394_s25 = smov %s1047_s26  ;;  %s1395_s26 = smov %s1228_s17 }
 0x388   : > { %s1396_s27 = smov %s1212_s13  ;;  %23 = sbr.rel (!%p21_p2) target bundleno = 6 (0x6), region = 101 }
 0x38f   :  { %577 = vsyncpa [#allocation3], 1 }
 0x390   :  { %579 = vsyncpa [#allocation3 + $0x1], 1 }
 0x391   :  { %580 = vsyncpa [#allocation6], 1 }
 0x392   :  { %581 = vsyncpa [#allocation4], 1 }
 0x393   :  { %583 = vsyncpa [#allocation4 + $0x1], 1 }

</bundles_post_ra>
